<compile_context>
chip_gen: v7x
topology: tpu7x:2x2x1
jax: 0.10.0
libtpu: 0.0.40
codegen_flags: <defaults>
</compile_context>

<pallas_src>
import functools

import jax
import jax.numpy as jnp
from jax.experimental import pallas as pl
from jax.experimental.pallas import tpu as pltpu

# Logical layer sizes (mirror the PyTorch module).
H1, H2, H3, OUT = 35, 70, 25, 2

LANE = 128           # vreg lane width
F_PAD = 128          # hidden feature dims padded to one full lane width
OUT_PAD = 8          # output feature dim padded to one f32 sublane
SUBLANE = 16         # bf16 sublane packing -> batch tiles are multiples of 16
TILE_B_MAX = 2048    # streamed batch tile (2-4K keeps per-step overhead ~10%)


def simplenet_kernel(x_ref,
                     w1_ref, b1_ref,
                     w2_ref, b2_ref,
                     w3_ref, b3_ref,
                     w4t_ref, b4t_ref,
                     o_ref, *, act_dtype):
    """Fused forward: 3x (Linear + tanh) + transposed output Linear.

    Matmuls run bf16 x bf16 -> f32 on the MXU.  Bias adds stay f32; tanh runs
    in `act_dtype` (bf16 on v6e/v7x, f32 on v5e).  The final layer contracts
    h's lane dim against w4^T, producing a lane-dense (OUT_PAD, tile_b) block.
    """
    h = x_ref[...].astype(jnp.bfloat16)                     # (tile_b, in) bf16
    for w_ref, b_ref in ((w1_ref, b1_ref), (w2_ref, b2_ref), (w3_ref, b3_ref)):
        acc = jnp.dot(h, w_ref[...],
                      preferred_element_type=jnp.float32) + b_ref[...]
        h = jnp.tanh(acc.astype(act_dtype)).astype(jnp.bfloat16)
    out_t = jax.lax.dot_general(                            # (OUT_PAD, tile_b)
        w4t_ref[...], h,
        dimension_numbers=(((1,), (1,)), ((), ())),
        preferred_element_type=jnp.float32)
    o_ref[...] = out_t + b4t_ref[...]                       # lane-dense f32 store


def _round_up(x, m):
    return ((x + m - 1) // m) * m


def _pad2(a, rows, cols):
    return jnp.pad(a, ((0, rows - a.shape[0]), (0, cols - a.shape[1])))


def pad_params(params):
    """Pad params for the kernel.

    Hidden weights -> (K, 128) bf16 (layer-1 K kept at the REAL input width,
    so no input padding is needed), hidden biases -> (1, 128) f32; the output
    layer is stored transposed: w4^T -> (OUT_PAD, 128) bf16, b4 -> (OUT_PAD, 1) f32.
    """
    (w1, b1), (w2, b2), (w3, b3), (w4, b4) = params
    w1p = _pad2(w1, w1.shape[0], F_PAD).astype(jnp.bfloat16)        # (in, 128)
    w2p = _pad2(w2, F_PAD, F_PAD).astype(jnp.bfloat16)              # (128, 128)
    w3p = _pad2(w3, F_PAD, F_PAD).astype(jnp.bfloat16)              # (128, 128)
    b1p = _pad2(b1, 1, F_PAD).astype(jnp.float32)                   # (1, 128)
    b2p = _pad2(b2, 1, F_PAD).astype(jnp.float32)
    b3p = _pad2(b3, 1, F_PAD).astype(jnp.float32)
    w4t = _pad2(w4.T, OUT_PAD, F_PAD).astype(jnp.bfloat16)          # (8, 128)
    b4t = _pad2(b4.reshape(-1, 1), OUT_PAD, 1).astype(jnp.float32)  # (8, 1)
    return [(w1p, b1p), (w2p, b2p), (w3p, b3p), (w4t, b4t)]


def _bf16_activation_ok():
    """bf16 EUP/VPU exist on v6e/v7x; keep the f32 tanh path elsewhere."""
    try:
        kind = jax.devices()[0].device_kind.lower()
    except Exception:  # pragma: no cover - defensive
        return False
    return ("v6" in kind) or ("v7" in kind)


def _choose_tiling(batch):
    """Pick (padded_batch, tile_b, num_tiles).

    * tile_b is a multiple of 128 whenever the grid has >1 step (keeps the
      transposed output store lane-dense); otherwise just a sublane multiple.
    * At least 2 grid steps when that adds no padded rows, so the "parallel"
      batch axis can be sharded over v7x's two TensorCores.
    * Never rounds the batch up by a whole extra tile.
    """
    bp = _round_up(batch, SUBLANE)
    num_tiles = pl.cdiv(bp, TILE_B_MAX)
    if num_tiles == 1 and bp >= 2 * LANE and bp % (2 * LANE) == 0:
        num_tiles = 2                       # free split for v7x's second core
    if num_tiles == 1:
        return bp, bp, 1
    tile_b = _round_up(pl.cdiv(bp, num_tiles), LANE)
    return num_tiles * tile_b, tile_b, num_tiles


def simplenet_forward(x, padded_params):
    """Batch-gridded pallas_call: resident weights, streamed f32 activations."""
    (w1, b1), (w2, b2), (w3, b3), (w4t, b4t) = padded_params
    batch, in_features = x.shape
    assert w1.shape[0] == in_features, (w1.shape, in_features)

    bp, tile_b, num_tiles = _choose_tiling(batch)
    x = x.astype(jnp.float32)
    if bp != batch:                          # pad batch rows only (features untouched)
        x = jnp.pad(x, ((0, bp - batch), (0, 0)))

    act_dtype = jnp.bfloat16 if _bf16_activation_ok() else jnp.float32
    kernel = functools.partial(simplenet_kernel, act_dtype=act_dtype)

    x_spec = pl.BlockSpec((tile_b, in_features), lambda i: (i, 0))     # streamed
    out_spec = pl.BlockSpec((OUT_PAD, tile_b), lambda i: (0, i))       # streamed
    w1_spec = pl.BlockSpec((in_features, F_PAD), lambda i: (0, 0))     # resident
    w_spec = pl.BlockSpec((F_PAD, F_PAD), lambda i: (0, 0))            # resident
    b_spec = pl.BlockSpec((1, F_PAD), lambda i: (0, 0))                # resident
    w4t_spec = pl.BlockSpec((OUT_PAD, F_PAD), lambda i: (0, 0))        # resident
    b4t_spec = pl.BlockSpec((OUT_PAD, 1), lambda i: (0, 0))            # resident

    out_t = pl.pallas_call(
        kernel,
        out_shape=jax.ShapeDtypeStruct((OUT_PAD, bp), jnp.float32),
        grid=(num_tiles,),
        in_specs=[x_spec,
                  w1_spec, b_spec,
                  w_spec, b_spec,
                  w_spec, b_spec,
                  w4t_spec, b4t_spec],
        out_specs=out_spec,
        compiler_params=pltpu.CompilerParams(
            dimension_semantics=("parallel",),      # shard batch over TCs (v7x)
            vmem_limit_bytes=32 * 1024 * 1024),
    )(x, w1, b1, w2, b2, w3, b3, w4t, b4t)

    return out_t[:OUT, :batch].T                    # (batch, 2)


def init_params(key, input_size):
    """nn.Linear-style init U(-1/sqrt(in), 1/sqrt(in)); weights stored [in, out]."""
    dims = [(input_size, H1), (H1, H2), (H2, H3), (H3, OUT)]
    params = []
    for fan_in, fan_out in dims:
        key, kw, kb = jax.random.split(key, 3)
        bound = 1.0 / (fan_in ** 0.5)
        w = jax.random.uniform(kw, (fan_in, fan_out), jnp.float32, -bound, bound)
        b = jax.random.uniform(kb, (1, fan_out), jnp.float32, -bound, bound)
        params.append((w, b))
    return params


def reference_forward_mirror(x, params, act_dtype):
    """Pure-JAX reference mirroring the kernel numerics (bf16 matmul inputs,
    f32 accumulation, tanh in act_dtype)."""
    hi = jax.lax.Precision.HIGHEST
    (w1, b1), (w2, b2), (w3, b3), (w4, b4) = params
    h = x.astype(jnp.bfloat16)
    for w, b in ((w1, b1), (w2, b2), (w3, b3)):
        acc = jnp.dot(h.astype(jnp.float32),
                      w.astype(jnp.bfloat16).astype(jnp.float32),
                      precision=hi) + b
        h = jnp.tanh(acc.astype(act_dtype)).astype(jnp.bfloat16)
    return jnp.dot(h.astype(jnp.float32),
                   w4.astype(jnp.bfloat16).astype(jnp.float32),
                   precision=hi) + b4


def reference_forward_f32(x, params):
    """Original-module semantics in full f32 (loose check of bf16 quantization)."""
    hi = jax.lax.Precision.HIGHEST
    (w1, b1), (w2, b2), (w3, b3), (w4, b4) = params
    h = jnp.tanh(jnp.dot(x, w1, precision=hi) + b1)
    h = jnp.tanh(jnp.dot(h, w2, precision=hi) + b2)
    h = jnp.tanh(jnp.dot(h, w3, precision=hi) + b3)
    return jnp.dot(h, w4, precision=hi) + b4


if __name__ == "__main__":
    key = jax.random.PRNGKey(0)
    k_x, k_p = jax.random.split(key)

    batch, input_size = 8, 16
    x = jax.random.normal(k_x, (batch, input_size), jnp.float32)
    params = init_params(k_p, input_size)
    padded_params = pad_params(params)

    out = simplenet_forward(x, padded_params)
    out = jax.block_until_ready(out)
    assert out.shape == (batch, OUT), out.shape

    # Check vs. a reference mirroring the kernel's exact bf16/f32 numerics.
    act_dtype = jnp.bfloat16 if _bf16_activation_ok() else jnp.float32
    ref_mirror = reference_forward_mirror(x, params, act_dtype)
    assert jnp.allclose(out, ref_mirror, atol=3e-2, rtol=3e-2), "mismatch vs mirrored ref"

    # Loose check vs. the original f32 module semantics (bf16 quantization noise).
    ref_f32 = reference_forward_f32(x, params)
    assert jnp.allclose(out, ref_f32, atol=6e-2, rtol=6e-2), "mismatch vs f32 ref"

    print("KERNEL_OK")
</pallas_src>

<mosaic_0001>
module attributes {stable_mosaic.version = 11 : i64} {
  func.func @simplenet_kernel(%arg0: i32, %arg1: memref<16x16xf32, #tpu.memory_space<vmem>>, %arg2: memref<16x128xbf16, #tpu.memory_space<vmem>>, %arg3: memref<1x128xf32, #tpu.memory_space<vmem>>, %arg4: memref<128x128xbf16, #tpu.memory_space<vmem>>, %arg5: memref<1x128xf32, #tpu.memory_space<vmem>>, %arg6: memref<128x128xbf16, #tpu.memory_space<vmem>>, %arg7: memref<1x128xf32, #tpu.memory_space<vmem>>, %arg8: memref<8x128xbf16, #tpu.memory_space<vmem>>, %arg9: memref<8x1xf32, #tpu.memory_space<vmem>>, %arg10: memref<8x16xf32, #tpu.memory_space<vmem>>) attributes {dimension_semantics = [#tpu.dimension_semantics<parallel>], iteration_bounds = array<i64: 1>, scalar_prefetch = 0 : i64, scratch_operands = 0 : i64, tpu.core_type = #tpu.core_type<tc>, window_params = [{transform_indices = @transform_0, window_bounds = array<i64: 16, 16>}, {pipeline_mode = #tpu.pipeline_mode<synchronous>, transform_indices = @transform_1, window_bounds = array<i64: 16, 128>}, {pipeline_mode = #tpu.pipeline_mode<synchronous>, transform_indices = @transform_2, window_bounds = array<i64: 1, 128>}, {pipeline_mode = #tpu.pipeline_mode<synchronous>, transform_indices = @transform_3, window_bounds = array<i64: 128, 128>}, {pipeline_mode = #tpu.pipeline_mode<synchronous>, transform_indices = @transform_4, window_bounds = array<i64: 1, 128>}, {pipeline_mode = #tpu.pipeline_mode<synchronous>, transform_indices = @transform_5, window_bounds = array<i64: 128, 128>}, {pipeline_mode = #tpu.pipeline_mode<synchronous>, transform_indices = @transform_6, window_bounds = array<i64: 1, 128>}, {pipeline_mode = #tpu.pipeline_mode<synchronous>, transform_indices = @transform_7, window_bounds = array<i64: 8, 128>}, {pipeline_mode = #tpu.pipeline_mode<synchronous>, transform_indices = @transform_8, window_bounds = array<i64: 8, 1>}, {transform_indices = @transform_9, window_bounds = array<i64: 8, 16>}]} {
    %c0 = arith.constant 0 : index
    %c0_0 = arith.constant 0 : index
    %0 = vector.load %arg1[%c0, %c0_0] : memref<16x16xf32, #tpu.memory_space<vmem>>, vector<16x16xf32>
    %1 = arith.truncf %0 : vector<16x16xf32> to vector<16x16xbf16>
    %c0_1 = arith.constant 0 : index
    %c0_2 = arith.constant 0 : index
    %2 = vector.load %arg2[%c0_1, %c0_2] : memref<16x128xbf16, #tpu.memory_space<vmem>>, vector<16x128xbf16>
    %cst = arith.constant dense<0.000000e+00> : vector<16x128xf32>
    %3 = tpu.matmul %1, %2, %cst {dimension_numbers = #tpu.dot_dimension_numbers<[1], [0], [0], [1], [0, 0, 1, 1], [], []>} : vector<16x16xbf16>, vector<16x128xbf16>, vector<16x128xf32> -> vector<16x128xf32>
    %c0_3 = arith.constant 0 : index
    %c0_4 = arith.constant 0 : index
    %4 = vector.load %arg3[%c0_3, %c0_4] : memref<1x128xf32, #tpu.memory_space<vmem>>, vector<1x128xf32>
    %5 = vector.broadcast %4 : vector<1x128xf32> to vector<16x128xf32>
    %6 = arith.addf %3, %5 : vector<16x128xf32>
    %7 = math.tanh %6 : vector<16x128xf32>
    %8 = arith.truncf %7 : vector<16x128xf32> to vector<16x128xbf16>
    %c0_5 = arith.constant 0 : index
    %c0_6 = arith.constant 0 : index
    %9 = vector.load %arg4[%c0_5, %c0_6] : memref<128x128xbf16, #tpu.memory_space<vmem>>, vector<128x128xbf16>
    %cst_7 = arith.constant dense<0.000000e+00> : vector<16x128xf32>
    %10 = tpu.matmul %8, %9, %cst_7 {dimension_numbers = #tpu.dot_dimension_numbers<[1], [0], [0], [1], [0, 0, 1, 1], [], []>} : vector<16x128xbf16>, vector<128x128xbf16>, vector<16x128xf32> -> vector<16x128xf32>
    %c0_8 = arith.constant 0 : index
    %c0_9 = arith.constant 0 : index
    %11 = vector.load %arg5[%c0_8, %c0_9] : memref<1x128xf32, #tpu.memory_space<vmem>>, vector<1x128xf32>
    %12 = vector.broadcast %11 : vector<1x128xf32> to vector<16x128xf32>
    %13 = arith.addf %10, %12 : vector<16x128xf32>
    %14 = math.tanh %13 : vector<16x128xf32>
    %15 = arith.truncf %14 : vector<16x128xf32> to vector<16x128xbf16>
    %c0_10 = arith.constant 0 : index
    %c0_11 = arith.constant 0 : index
    %16 = vector.load %arg6[%c0_10, %c0_11] : memref<128x128xbf16, #tpu.memory_space<vmem>>, vector<128x128xbf16>
    %cst_12 = arith.constant dense<0.000000e+00> : vector<16x128xf32>
    %17 = tpu.matmul %15, %16, %cst_12 {dimension_numbers = #tpu.dot_dimension_numbers<[1], [0], [0], [1], [0, 0, 1, 1], [], []>} : vector<16x128xbf16>, vector<128x128xbf16>, vector<16x128xf32> -> vector<16x128xf32>
    %c0_13 = arith.constant 0 : index
    %c0_14 = arith.constant 0 : index
    %18 = vector.load %arg7[%c0_13, %c0_14] : memref<1x128xf32, #tpu.memory_space<vmem>>, vector<1x128xf32>
    %19 = vector.broadcast %18 : vector<1x128xf32> to vector<16x128xf32>
    %20 = arith.addf %17, %19 : vector<16x128xf32>
    %21 = math.tanh %20 : vector<16x128xf32>
    %22 = arith.truncf %21 : vector<16x128xf32> to vector<16x128xbf16>
    %c0_15 = arith.constant 0 : index
    %c0_16 = arith.constant 0 : index
    %23 = vector.load %arg8[%c0_15, %c0_16] : memref<8x128xbf16, #tpu.memory_space<vmem>>, vector<8x128xbf16>
    %cst_17 = arith.constant dense<0.000000e+00> : vector<8x16xf32>
    %24 = tpu.matmul %23, %22, %cst_17 {dimension_numbers = #tpu.dot_dimension_numbers<[1], [1], [0], [0], [0, 0, 1, 0], [], []>} : vector<8x128xbf16>, vector<16x128xbf16>, vector<8x16xf32> -> vector<8x16xf32>
    %c0_18 = arith.constant 0 : index
    %c0_19 = arith.constant 0 : index
    %25 = vector.load %arg9[%c0_18, %c0_19] : memref<8x1xf32, #tpu.memory_space<vmem>>, vector<8x1xf32>
    %26 = vector.broadcast %25 : vector<8x1xf32> to vector<8x16xf32>
    %27 = arith.addf %24, %26 : vector<8x16xf32>
    %c0_20 = arith.constant 0 : index
    %c0_21 = arith.constant 0 : index
    %28 = vector.load %arg10[%c0_20, %c0_21] : memref<8x16xf32, #tpu.memory_space<vmem>>, vector<8x16xf32>
    tpu.vector_store %arg10[%c0_20, %c0_21], %27 {strides = array<i32>} : memref<8x16xf32, #tpu.memory_space<vmem>>, vector<8x16xf32>,
    return
  }
  func.func @transform_0(%arg0: i32) -> (i32, i32) {
    %c0_i32 = arith.constant 0 : i32
    %c0_i32_0 = arith.constant 0 : i32
    return %arg0, %c0_i32 : i32, i32
  }
  func.func @transform_1(%arg0: i32) -> (i32, i32) {
    %c0_i32 = arith.constant 0 : i32
    %c0_i32_0 = arith.constant 0 : i32
    %c0_i32_1 = arith.constant 0 : i32
    return %c0_i32, %c0_i32_0 : i32, i32
  }
  func.func @transform_2(%arg0: i32) -> (i32, i32) {
    %c0_i32 = arith.constant 0 : i32
    %c0_i32_0 = arith.constant 0 : i32
    %c0_i32_1 = arith.constant 0 : i32
    return %c0_i32, %c0_i32_0 : i32, i32
  }
  func.func @transform_3(%arg0: i32) -> (i32, i32) {
    %c0_i32 = arith.constant 0 : i32
    %c0_i32_0 = arith.constant 0 : i32
    %c0_i32_1 = arith.constant 0 : i32
    return %c0_i32, %c0_i32_0 : i32, i32
  }
  func.func @transform_4(%arg0: i32) -> (i32, i32) {
    %c0_i32 = arith.constant 0 : i32
    %c0_i32_0 = arith.constant 0 : i32
    %c0_i32_1 = arith.constant 0 : i32
    return %c0_i32, %c0_i32_0 : i32, i32
  }
  func.func @transform_5(%arg0: i32) -> (i32, i32) {
    %c0_i32 = arith.constant 0 : i32
    %c0_i32_0 = arith.constant 0 : i32
    %c0_i32_1 = arith.constant 0 : i32
    return %c0_i32, %c0_i32_0 : i32, i32
  }
  func.func @transform_6(%arg0: i32) -> (i32, i32) {
    %c0_i32 = arith.constant 0 : i32
    %c0_i32_0 = arith.constant 0 : i32
    %c0_i32_1 = arith.constant 0 : i32
    return %c0_i32, %c0_i32_0 : i32, i32
  }
  func.func @transform_7(%arg0: i32) -> (i32, i32) {
    %c0_i32 = arith.constant 0 : i32
    %c0_i32_0 = arith.constant 0 : i32
    %c0_i32_1 = arith.constant 0 : i32
    return %c0_i32, %c0_i32_0 : i32, i32
  }
  func.func @transform_8(%arg0: i32) -> (i32, i32) {
    %c0_i32 = arith.constant 0 : i32
    %c0_i32_0 = arith.constant 0 : i32
    %c0_i32_1 = arith.constant 0 : i32
    return %c0_i32, %c0_i32_0 : i32, i32
  }
  func.func @transform_9(%arg0: i32) -> (i32, i32) {
    %c0_i32 = arith.constant 0 : i32
    %c0_i32_0 = arith.constant 0 : i32
    return %c0_i32, %arg0 : i32, i32
  }
}

</mosaic_0001>

<bundles_post_ra>
// kernel: tpu_custom_call.1
= control target key start
LH: loop header
LB: loop body
LE: loop exit
PB: predicated region body
PF: predicated region fallthrough
CT: control target
= control target key end

     0   :  { %14 = vsyncpa [#allocation3], 0  ;;  %s826_s0 = inlined_call_operand.hbm [shape: f32[16,16], index: 0, kind: input, shape index: {}]   ;;  %s827_s1 = inlined_call_operand.vmem [shape: bf16[16,128], index: 1, kind: input, shape index: {}]   ;;  %s828_s2 = inlined_call_operand.vmem [shape: f32[1,128], index: 2, kind: input, shape index: {}]   ;;  %s829_s3 = inlined_call_operand.hbm [shape: bf16[128,128], index: 3, kind: input, shape index: {}]   ;;  %s830_s4 = inlined_call_operand.vmem [shape: f32[1,128], index: 4, kind: input, shape index: {}]   ;;  %s831_s5 = inlined_call_operand.hbm [shape: bf16[128,128], index: 5, kind: input, shape index: {}]   ;;  %s832_s6 = inlined_call_operand.vmem [shape: f32[1,128], index: 6, kind: input, shape index: {}]   ;;  %s833_s7 = inlined_call_operand.vmem [shape: bf16[8,128], index: 7, kind: input, shape index: {}]   ;;  %s834_s8 = inlined_call_operand.vmem [shape: f32[8,1], index: 8, kind: input, shape index: {}]   ;;  %s835_s9 = inlined_call_operand.hbm [shape: f32[8,16], index: 9, kind: output, shape index: {}]  }
   0x1   :  { %15 = vsyncpa [#allocation6], 0 }
   0x2   :  { %16 = vsyncpa [#allocation4], 0  ;;  %s665_s30 = smov [#allocation5]   ;;  %s571_s13 = scalar_lea.hbm %s829_s3, 1024 }
   0x3   :  { %s38_s10 = sshll.u32 %s665_s30, 4  ;;  %p572_p0 = scmp.ne.s32.totalorder %s829_s3, %s571_s13  ;;  %s39_s10 = int_to_ptr.vmem [resolvable:$true] %s38_s10 }
   0x4   :  { %p575_p1 = scmp.lt.u32.totalorder %s571_s13, %s829_s3 }
   0x6   :  { %p577_p2 = pnand %p575_p1, %p572_p0 }
   0x8   :  { %580 = shalt.err (!%p577_p2)
}
   0x9   :  { %s581_s18 = scalar_lea.vmem %s39_s10, 1024  ;;  %p586_p4 = scmp.lt.s32.totalorder %s39_s10, %s39_s10 }
   0xa   :  { %p582_p3 = scmp.ne.s32.totalorder %s39_s10, %s581_s18  ;;  %p587_p5 = scmp.lt.s32.totalorder %s581_s18, %s581_s18 }
   0xc   :  { %p588_p6 = por %p587_p5, %p586_p4 }
   0xe   :  { %p589_p7 = pnand %p588_p6, %p582_p3 }
  0x10   :  { %592 = shalt.err (!%p589_p7)
}
  0x11   :  { %s666_s19 = smov 64   ;;  %s667_s20 = smov 4  }
  0x12   :  { %44 = dma.hbm_to_vmem [thread:$0]  %s829_s3, 1024, %s39_s10, [#allocation6], %s666_s19, %s666_s19, %s667_s20  }
  0x13   :  { %s668_s23 = smov [#allocation2]   ;;  %s593_s27 = scalar_lea.hbm %s826_s0, 256 }
  0x14   :  { %s22_s24 = sshll.u32 %s668_s23, 4  ;;  %p594_p8 = scmp.ne.s32.totalorder %s826_s0, %s593_s27  ;;  %s23_s24 = int_to_ptr.vmem [resolvable:$true] %s22_s24 }
  0x15   :  { %p597_p9 = scmp.lt.u32.totalorder %s593_s27, %s826_s0 }
  0x17   :  { %p599_p10 = pnand %p597_p9, %p594_p8 }
  0x19   :  { %602 = shalt.err (!%p599_p10)
}
  0x1a   :  { %s603_s12 = scalar_lea.vmem %s23_s24, 256  ;;  %p608_p12 = scmp.lt.s32.totalorder %s23_s24, %s23_s24 }
  0x1b   :  { %p604_p11 = scmp.ne.s32.totalorder %s23_s24, %s603_s12  ;;  %p609_p13 = scmp.lt.s32.totalorder %s603_s12, %s603_s12 }
  0x1d   :  { %p610_p0 = por %p609_p13, %p608_p12 }
  0x1f   :  { %p611_p1 = pnand %p610_p0, %p604_p11 }
  0x21   :  { %614 = shalt.err (!%p611_p1)
}
  0x22   :  { %s669_s3 = smov 128   ;;  %s670_s10 = smov 8  }
  0x23   :  { %28 = dma.hbm_to_vmem [thread:$0]  %s826_s0, 256, %s23_s24, [#allocation3], %s669_s3, %s669_s3, %s670_s10  }
  0x24   :  { %s671_s15 = smov [#allocation7]   ;;  %s615_s21 = scalar_lea.hbm %s831_s5, 1024 }
  0x25   :  { %s52_s16 = sshll.u32 %s671_s15, 4  ;;  %p616_p2 = scmp.ne.s32.totalorder %s831_s5, %s615_s21  ;;  %s53_s16 = int_to_ptr.vmem [resolvable:$true] %s52_s16 }
  0x26   :  { %p619_p3 = scmp.lt.u32.totalorder %s615_s21, %s831_s5 }
  0x28   :  { %p621_p4 = pnand %p619_p3, %p616_p2 }
  0x2a   :  { %624 = shalt.err (!%p621_p4)
}
  0x2b   :  { %s625_s27 = scalar_lea.vmem %s53_s16, 1024  ;;  %p630_p6 = scmp.lt.s32.totalorder %s53_s16, %s53_s16 }
  0x2c   :  { %p626_p5 = scmp.ne.s32.totalorder %s53_s16, %s625_s27  ;;  %p631_p7 = scmp.lt.s32.totalorder %s625_s27, %s625_s27 }
  0x2e   :  { %p632_p8 = por %p631_p7, %p630_p6 }
  0x30   :  { %p633_p9 = pnand %p632_p8, %p626_p5 }
  0x32   :  { %636 = shalt.err (!%p633_p9)
}
  0x33   :  { %58 = dma.hbm_to_vmem [thread:$0]  %s831_s5, 1024, %s53_s16, [#allocation6], %s666_s19, %s666_s19, %s667_s20  }
  0x34   :  { %659 = dma.done.wait [#allocation3], 256  }
  0x35   :  { %660 = vsyncadd [#allocation3], 4294967040 }
  0x36   :  { %661 = dma.done.wait [#allocation6], 2048  }
  0x37   :  { %662 = vsyncadd [#allocation6], 4294965248  ;;  %v672_v0 = vmov 0.0   ;;  %vm673_vm0 = vmmov 0   ;;  %v542_v1 = vld [vmem:[%s827_s1] sm:$0xff]   ;;  %v76_v3 = vld [vmem:[#allocation2 + $0x8] sm:$0xff] }
  0x38   :  { %478 = vmatprep.subr.bf16.mxu0 %v672_v0  ;;  %480 = vmatprep.mubr.msk.bf16.mxu0 %vm673_vm0, %v672_v0  ;;  %v75_v2 = vld [vmem:[#allocation2] sm:$0xff]  ;;  %vm93_vm1 = vcmask 130048   ;;  %v543_v5 = vld [vmem:[#allocation5] sm:$0xff]   ;;  %v544_v6 = vld [vmem:[#allocation5 + $0x8] sm:$0xff]   ;;  %v674_v42 = vmov 0   ;;  %s675_s3 = smov [#allocation8]  }
  0x39   :  { %484 = vmatprep.subr.bf16.mxu1 %v672_v0  ;;  %500 = vmatprep.mubr.msk.bf16.mxu1 %vm673_vm0, %v672_v0  ;;  %v77_v4 = vpack.c.bf16 %v76_v3, %v75_v2  ;;  %v545_v7 = vld [vmem:[#allocation5 + $0x10] sm:$0xff]   ;;  %v546_v8 = vld [vmem:[#allocation5 + $0x18] sm:$0xff]   ;;  %v547_v9 = vld [vmem:[#allocation5 + $0x20] sm:$0xff]  }
  0x3a   :  { %479 = vmatpush3.bf16.msra.mxu0 %v542_v1  ;;  %485 = vmatpush3.bf16.msra.mxu1 %v543_v5  ;;  %v548_v10 = vld [vmem:[#allocation5 + $0x28] sm:$0xff]   ;;  %v549_v11 = vld [vmem:[#allocation5 + $0x30] sm:$0xff]   ;;  %v550_v12 = vld [vmem:[#allocation5 + $0x38] sm:$0xff]  }
  0x3b   :  { %504 = vmatprep.subr.bf16.mxu0 %v672_v0  ;;  %486 = vmatprep.subr.bf16.mxu1 %v672_v0  ;;  %v551_v13 = vld [vmem:[#allocation7] sm:$0xff]   ;;  %v552_v14 = vld [vmem:[#allocation7 + $0x8] sm:$0xff]   ;;  %v553_v15 = vld [vmem:[#allocation7 + $0x10] sm:$0xff]  }
  0x3c   :  { %v554_v16 = vld [vmem:[#allocation7 + $0x18] sm:$0xff]   ;;  %v435_v17 = vld [vmem:[%s828_s2] ss:$0 sm:$0xff]  ;;  %v555_v27 = vld [vmem:[#allocation7 + $0x20] sm:$0xff]   ;;  %541 = vset.pattern.permute.xlu0 %v674_v42 }
  0x3d   :  { %481 = vmatmul.mubr.msk.bf16.vlgmr.msra.gmra.mrb[0].mxu0 %vm93_vm1, %v77_v4  ;;  %v556_v28 = vld [vmem:[#allocation7 + $0x28] sm:$0xff]   ;;  %v557_v29 = vld [vmem:[#allocation7 + $0x30] sm:$0xff]   ;;  %v558_v30 = vld [vmem:[#allocation7 + $0x38] sm:$0xff]  }
  0x3e   :  { %520 = vmatprep.mubr.msk.bf16.mxu0 %vm673_vm0, %v672_v0  ;;  %487 = vmatpush3.bf16.msra.mxu1 %v544_v6  ;;  %v438_v31 = vld [vmem:[%s830_s4] ss:$0 sm:$0xff] }
  0x3f   :  { %488 = vmatprep.subr.bf16.mxu1 %v672_v0  ;;  %505 = vmatpush3.bf16.msra.mxu0 %v551_v13  ;;  %v372_v41 = vld [vmem:[%s834_s8] sm:$0xff] }
  0x40   :  { %506 = vmatprep.subr.bf16.mxu0 %v672_v0  ;;  %375 = vperm.xlu0 %541, %v372_v41   ;;  %v447_v43 = vld [vmem:[%s832_s6] ss:$0 sm:$0xff]  ;;  %s425_s6 = sshll.u32 %s675_s3, 4  ;;  %s426_s6 = int_to_ptr.vmem [resolvable:$true] %s425_s6 }
  0x41   :  { %v371_v53 = vld [vmem:[%s833_s7] sm:$0xf]  ;;  %s637_s10 = scalar_lea.vmem %s426_s6, 128  ;;  %p642_p11 = scmp.lt.s32.totalorder %s426_s6, %s426_s6 }
  0x42   :  { %489 = vmatpush3.bf16.msra.mxu1 %v545_v7  ;;  %p638_p10 = scmp.ne.s32.totalorder %s426_s6, %s637_s10  ;;  %p643_p12 = scmp.lt.s32.totalorder %s637_s10, %s637_s10 }
  0x43   :  { %490 = vmatprep.subr.bf16.mxu1 %v672_v0  ;;  %507 = vmatpush3.bf16.msra.mxu0 %v552_v14 }
  0x44   :  { %508 = vmatprep.subr.bf16.mxu0 %v672_v0  ;;  %p644_p13 = por %p643_p12, %p642_p11 }
  0x46   :  { %491 = vmatpush3.bf16.msra.mxu1 %v546_v8  ;;  %p645_p0 = pnand %p644_p13, %p638_p10 }
  0x47   :  { %492 = vmatprep.subr.bf16.mxu1 %v672_v0  ;;  %509 = vmatpush3.bf16.msra.mxu0 %v553_v15 }
  0x48   :  { %510 = vmatprep.subr.bf16.mxu0 %v672_v0 }
  0x4a   :  { %493 = vmatpush3.bf16.msra.mxu1 %v547_v9 }
  0x4b   :  { %494 = vmatprep.subr.bf16.mxu1 %v672_v0  ;;  %511 = vmatpush3.bf16.msra.mxu0 %v554_v16 }
  0x4c   :  { %512 = vmatprep.subr.bf16.mxu0 %v672_v0 }
  0x4e   :  { %495 = vmatpush3.bf16.msra.mxu1 %v548_v10 }
  0x4f   :  { %496 = vmatprep.subr.bf16.mxu1 %v672_v0  ;;  %513 = vmatpush3.bf16.msra.mxu0 %v555_v27 }
  0x50   :  { %514 = vmatprep.subr.bf16.mxu0 %v672_v0 }
  0x52   :  { %497 = vmatpush3.bf16.msra.mxu1 %v549_v11 }
  0x53   :  { %498 = vmatprep.subr.bf16.mxu1 %v672_v0  ;;  %515 = vmatpush3.bf16.msra.mxu0 %v556_v28 }
  0x54   :  { %516 = vmatprep.subr.bf16.mxu0 %v672_v0 }
  0x56   :  { %499 = vmatpush3.bf16.msra.mxu1 %v550_v12 }
  0x57   :  { %524 = vmatprep.subr.bf16.mxu1 %v672_v0  ;;  %517 = vmatpush3.bf16.msra.mxu0 %v557_v29 }
  0x58   :  { %518 = vmatprep.subr.bf16.mxu0 %v672_v0 }
  0x5b   :  { %519 = vmatpush3.bf16.msra.mxu0 %v558_v30 }
  0xbf   :  { %v376_v54 = vpop.permute.xlu0 %375 }
 0x110   :  { %v131_v18 = vpop.f32.mrb[0].mxu0 }
 0x111   :  { %v132_v19 = vadd.f32 %v435_v17, %v131_v18  ;;  %v482_v20 = vpop.f32.mrb[1].mxu0 }
 0x112   :  { %v134_v21 = vpop.f32.mrb[2].mxu0 }
 0x113   :  { %v135_v22 = vadd.f32 %v435_v17, %v134_v21  ;;  %v483_v23 = vpop.f32.mrb[3].mxu0  ;;  %559 = vtanh.f32 %v132_v19 }
 0x115   :  { %561 = vtanh.f32 %v135_v22 }
 0x11d   :  { %v560_v24 = vpop.eup %559 }
 0x11f   :  { %v562_v25 = vpop.eup %561 }
 0x120   :  { %v140_v26 = vpack.c.bf16 %v562_v25, %v560_v24 }
 0x122   :  { %501 = vmatmul.mubr.bf16.vlgmr.msra.gmra.mrb[0].mxu1 %v140_v26 }
 0x123   :  { %526 = vmatprep.mubr.msk.bf16.mxu1 %vm673_vm0, %v672_v0 }
 0x1f5   :  { %v246_v32 = vpop.f32.mrb[0].mxu1 }
 0x1f6   :  { %v247_v33 = vadd.f32 %v438_v31, %v246_v32  ;;  %v502_v34 = vpop.f32.mrb[1].mxu1 }
 0x1f7   :  { %v249_v35 = vpop.f32.mrb[2].mxu1 }
 0x1f8   :  { %v250_v36 = vadd.f32 %v438_v31, %v249_v35  ;;  %v503_v37 = vpop.f32.mrb[3].mxu1  ;;  %563 = vtanh.f32 %v247_v33 }
 0x1fa   :  { %565 = vtanh.f32 %v250_v36 }
 0x202   :  { %v564_v38 = vpop.eup %563 }
 0x204   :  { %v566_v39 = vpop.eup %565 }
 0x205   :  { %v255_v40 = vpack.c.bf16 %v566_v39, %v564_v38 }
 0x207   :  { %521 = vmatmul.mubr.bf16.vlgmr.msra.gmra.mrb[4].mxu0 %v255_v40 }
 0x2da   :  { %v361_v44 = vpop.f32.mrb[4].mxu0 }
 0x2db   :  { %v362_v45 = vadd.f32 %v447_v43, %v361_v44  ;;  %v522_v46 = vpop.f32.mrb[5].mxu0 }
 0x2dc   :  { %v364_v47 = vpop.f32.mrb[6].mxu0 }
 0x2dd   :  { %v365_v48 = vadd.f32 %v447_v43, %v364_v47  ;;  %v523_v49 = vpop.f32.mrb[7].mxu0  ;;  %567 = vtanh.f32 %v362_v45 }
 0x2df   :  { %569 = vtanh.f32 %v365_v48 }
 0x2e7   :  { %v568_v50 = vpop.eup %567 }
 0x2e9   :  { %v570_v51 = vpop.eup %569 }
 0x2ea   :  { %v370_v52 = vpack.c.bf16 %v570_v51, %v568_v50 }
 0x2ec   :  { %525 = vmatpush3.bf16.xpose.msra.mxu1 %v370_v52 }
 0x2f3   :  { %527 = vmatmul.mubr.bf16.vlgmr.msra.gmra.mrb[4].mxu1 %v371_v53 }
 0x3c6   :  { %v412_v55 = vpop.f32.mrb[4].mxu1 }
 0x3c7   :  { %v413_v56 = vadd.f32 %v412_v55, %v376_v54  ;;  %v528_v57 = vpop.f32.mrb[5].mxu1 }
 0x3c8   :  { %v415_v58 = vpop.f32.mrb[6].mxu1 }
 0x3c9   :  { %418 = vst.msk [vmem:[#allocation8] sm:$0xff] %vm93_vm1, %v413_v56  ;;  %v529_v59 = vpop.f32.mrb[7].mxu1 }
 0x3ca   :  { %648 = shalt.err (!%p645_p0)
}
 0x3cb   :  { %s649_s14 = scalar_lea.hbm %s835_s9, 128 }
 0x3cc   :  { %p650_p1 = scmp.ne.s32.totalorder %s835_s9, %s649_s14  ;;  %p653_p2 = scmp.lt.u32.totalorder %s649_s14, %s835_s9 }
 0x3ce   :  { %p655_p3 = pnand %p653_p2, %p650_p1 }
 0x3d0   :  { %658 = shalt.err (!%p655_p3)
}
 0x3d1   :  { %428 = dma.vmem_to_hbm [thread:$0]  %s426_s6, 128, %s835_s9, [#allocation4]  }
 0x3d2   :  { %663 = dma.done.wait [#allocation4], 128  }
 0x3d3   :  { %664 = vsyncadd [#allocation4], 4294967168 }
 0x3d4   :  { %432 = vsyncpa [#allocation3], 1 }
 0x3d5   :  { %433 = vsyncpa [#allocation6], 1 }
 0x3d6   :  { %434 = vsyncpa [#allocation4], 1 }

</bundles_post_ra>
